<compile_context>
chip_gen: v6e
topology: v6e:2x2x1
jax: 0.10.0
libtpu: 0.0.40
codegen_flags: <defaults>
</compile_context>

<pallas_src>
import functools
import math

import jax
import jax.numpy as jnp
from jax.experimental import pallas as pl
from jax.experimental.pallas import tpu as pltpu

_LN2 = math.log(2.0)     # softplus(0): the shift in ShiftedSoftplus ("ssp")
_LANE = 128
_MIB = 1024 * 1024


def _round_up(x, m):
    return (x + m - 1) // m * m


def _cdiv(a, b):
    return (a + b - 1) // b


# ----------------------------------------------------------------------------- kernels
def _accumulate_tile(acc_ref, seg_ref, feat_ref, node_start, n_nodes):
    """acc += one_hot(seg_ids_tile) @ feat_tile  (bf16 MXU operands, f32 accumulation)."""
    g_pad = acc_ref.shape[0]
    tile_n = seg_ref.shape[1]
    # 0/1 node->graph assignment built in-register from int32 seg ids.  Padded ids are
    # -1 and never match, so padded / out-of-range nodes get all-zero columns.
    onehot = (jax.lax.broadcasted_iota(jnp.int32, (g_pad, tile_n), 0)
              == seg_ref[...]).astype(jnp.bfloat16)
    # In-kernel cast + ragged-row mask (the last tile may contain unspecified padding;
    # the MXU would propagate NaN/Inf even through zero one-hot columns).
    row = jax.lax.broadcasted_iota(jnp.int32, (tile_n, 1), 0) + node_start
    feat = jnp.where(row < n_nodes, feat_ref[...].astype(jnp.bfloat16), 0)
    acc_ref[...] += jnp.dot(onehot, feat, preferred_element_type=jnp.float32)


def _apply_mlp(x, w_refs, bias_ref):
    """Linear -> SSP -> ... -> Linear on the zero-padded, lane-dense dims (f32 math)."""
    n_layers = len(w_refs)
    for i in range(n_layers):
        w = w_refs[i][...]                               # bf16, zero-padded
        b = bias_ref[i:i + 1, :w.shape[1]]               # (1, fan_out) f32
        x = jnp.dot(x.astype(w.dtype), w, preferred_element_type=jnp.float32) + b
        if i < n_layers - 1:
            x = jax.nn.softplus(x) - _LN2                # shifted softplus
    return x


def _fused_kernel(n_layers, tile_n, n_nodes, seg_ref, feat_ref, scale_ref, *refs):
    """Single-core path: segment aggregation over node tiles + MLP on the last step."""
    w_refs = refs[:n_layers]
    bias_ref = refs[n_layers]
    out_ref = refs[n_layers + 1]
    acc_ref = refs[n_layers + 2]
    k = pl.program_id(0)

    @pl.when(k == 0)
    def _init():
        acc_ref[...] = jnp.zeros_like(acc_ref)

    _accumulate_tile(acc_ref, seg_ref, feat_ref, k * tile_n, n_nodes)

    @pl.when(k == pl.num_programs(0) - 1)
    def _finalize():
        x = acc_ref[...] * scale_ref[...]                # mean (1/n) or sum (1), in f32
        out_ref[...] = _apply_mlp(x, w_refs, bias_ref).astype(out_ref.dtype)


def _partial_agg_kernel(tiles_per_split, tile_n, n_nodes,
                        seg_ref, feat_ref, out_ref, acc_ref):
    """Multi-core path, pass 1: each split (leading "parallel" axis -> its own
    TensorCore) aggregates a disjoint node range into its own [G_pad, D] partial."""
    c = pl.program_id(0)
    k = pl.program_id(1)

    @pl.when(k == 0)
    def _init():
        acc_ref[...] = jnp.zeros_like(acc_ref)

    node_start = (c * tiles_per_split + k) * tile_n
    _accumulate_tile(acc_ref, seg_ref, feat_ref, node_start, n_nodes)

    @pl.when(k == tiles_per_split - 1)
    def _flush():
        out_ref[...] = acc_ref[...]


def _combine_mlp_kernel(n_layers, num_splits, g_pad, part_ref, scale_ref, *refs):
    """Multi-core path, pass 2 (tiny): sum per-split partials, scale, apply the MLP."""
    w_refs = refs[:n_layers]
    bias_ref = refs[n_layers]
    out_ref = refs[n_layers + 1]
    x = part_ref[0:g_pad, :]
    for s in range(1, num_splits):
        x = x + part_ref[s * g_pad:(s + 1) * g_pad, :]
    x = x * scale_ref[...]
    out_ref[...] = _apply_mlp(x, w_refs, bias_ref).astype(out_ref.dtype)


# ----------------------------------------------------------------------------- wrapper
def _tpu_generation_info():
    """(physical_vmem_bytes, tensorcores_per_device, is_v7x).  Conservative fallbacks."""
    kind = ""
    try:
        kind = jax.devices()[0].device_kind.lower()
    except Exception:
        pass
    is_v7x = ("v7" in kind) or ("tpu7" in kind)
    phys = None
    try:
        phys = getattr(pltpu.get_tpu_info(), "vmem_capacity_bytes", None)
    except Exception:
        phys = None
    if not phys or phys <= 0:
        # 64 MiB is the safe floor (v7x); v5e/v6e parts have 128 MiB.
        phys = 128 * _MIB if (not is_v7x and any(t in kind for t in ("v5", "v6"))) \
            else 64 * _MIB
    cores = 2 if is_v7x else 1
    return int(phys), cores, is_v7x


def graph_head_forward(feat, n_node, weights, biases, *,
                       node_aggregation="mean", tile_n=None, num_splits=None,
                       feat_buffers=2):
    """Pallas GraphHead.forward: feat [N, D], n_node [G] -> graph_pred [G, out_dim]."""
    N, D = feat.shape
    G = int(n_node.shape[0])
    n_layers = len(weights)
    assert n_layers == len(biases) and n_layers >= 1
    out_dim = int(weights[-1].shape[1])
    feat_bytes = jnp.dtype(feat.dtype).itemsize
    if node_aggregation not in ("mean", "sum"):
        raise ValueError(f"unsupported node_aggregation: {node_aggregation}")

    # Padded dims: graphs to 16 sublanes (bf16 MXU LHS packing), MLP fan-outs to 128 lanes.
    g_pad = _round_up(G, 16)
    dims = [D] + [_round_up(int(w.shape[1]), _LANE) for w in weights]
    out_pad = dims[-1]
    max_fan_out = max(dims[1:])
    weight_bytes = sum(di * do for di, do in zip(dims[:-1], dims[1:])) * 2     # bf16

    # Generation-aware VMEM budget and per-step feature-traffic target.
    phys_vmem, n_cores, is_v7x = _tpu_generation_info()
    vmem_budget = phys_vmem - 16 * _MIB                  # headroom for Mosaic internals
    target_step_bytes = 8 * _MIB if is_v7x else 4 * _MIB

    d_pad = _round_up(D, _LANE)
    fixed_vmem = (weight_bytes + n_layers * max_fan_out * 4    # weights + packed biases
                  + g_pad * _LANE * 4                          # per-graph scale (lane pad)
                  + g_pad * d_pad * 4                          # f32 accumulator scratch
                  + 2 * g_pad * max(out_pad, d_pad) * 4        # output / partial block
                  + 2 * _MIB)                                  # slack

    def _est(t):
        return (fixed_vmem
                + feat_buffers * t * D * feat_bytes            # pipelined feature tiles
                + feat_buffers * 8 * t * 4)                    # pipelined (1, t) int32 seg tiles

    if tile_n is None:
        tile_n = _round_up(max(target_step_bytes // max(D * feat_bytes, 1), _LANE), _LANE)
    tile_n = max(_LANE, min(_round_up(int(tile_n), _LANE), _round_up(max(N, 1), _LANE)))
    while tile_n > _LANE and _est(tile_n) > vmem_budget:
        tile_n -= _LANE

    num_tiles = _cdiv(N, tile_n)
    if num_splits is None:
        num_splits = n_cores if num_tiles >= 2 * n_cores else 1
    num_splits = max(1, min(int(num_splits), num_tiles))
    tiles_per_split = _cdiv(num_tiles, num_splits)
    coverage = num_splits * tiles_per_split * tile_n           # node-axis grid extent
    last_blk = num_tiles - 1

    # Tiny packed operands: seg ids (-1 padded), per-graph scale, bf16 weights, f32 biases.
    seg_ids = jnp.repeat(jnp.arange(G, dtype=jnp.int32), n_node, total_repeat_length=N)
    seg_ids = jnp.full((1, coverage), -1, jnp.int32).at[0, :N].set(seg_ids)

    n_node_f = jnp.zeros((g_pad,), jnp.float32).at[:G].set(n_node.astype(jnp.float32))
    if node_aggregation == "mean":
        scale = (1.0 / jnp.maximum(n_node_f, 1.0)).reshape(g_pad, 1)
    else:
        scale = jnp.ones((g_pad, 1), jnp.float32)

    w_pads = []
    for i, w in enumerate(weights):
        wp = jnp.zeros((dims[i], dims[i + 1]), jnp.bfloat16)
        w_pads.append(wp.at[:w.shape[0], :w.shape[1]].set(w.astype(jnp.bfloat16)))
    bias_pack = jnp.zeros((n_layers, max_fan_out), jnp.float32)
    for i, b in enumerate(biases):
        bias_pack = bias_pack.at[i, :b.shape[0]].set(b.astype(jnp.float32))

    vmem_resident = pl.BlockSpec(memory_space=pltpu.MemorySpace.VMEM)

    def _node_spec(block_shape, index_map):
        # Optional deeper pipelining of the node-tiled streams (sweep 2 vs 3 if per-step
        # DMA is still exposed after enlarging tiles).  Default (2) uses the plain spec.
        if feat_buffers != 2:
            return pl.BlockSpec(block_shape, index_map,
                                pipeline_mode=pl.Buffered(feat_buffers))
        return pl.BlockSpec(block_shape, index_map)

    vmem_limit = int(min(vmem_budget, max(_est(tile_n) + 8 * _MIB, 32 * _MIB)))
    mlp_flops = 2 * g_pad * sum(di * do for di, do in zip(dims[:-1], dims[1:]))
    mlp_trans = g_pad * sum(dims[1:-1])
    out_f32 = jax.ShapeDtypeStruct((g_pad, out_pad), jnp.float32)

    # TODO(synk): MLP dropout (train-time only) is not implemented; inference forward
    # treats it as identity.

    if num_splits == 1:
        # Fully fused: segment aggregation (reduction grid axis) + MLP on the last step.
        in_specs = [
            _node_spec((1, tile_n), lambda k: (0, k)),          # int32 seg-id tile
            _node_spec((tile_n, D), lambda k: (k, 0)),          # raw feature tile
            vmem_resident,                                      # per-graph scale
        ] + [vmem_resident] * (n_layers + 1)                    # weights + packed biases
        cost = pl.CostEstimate(
            flops=2 * g_pad * coverage * D + mlp_flops,
            transcendentals=mlp_trans,
            bytes_accessed=N * D * feat_bytes + coverage * 4 + weight_bytes
                           + g_pad * out_pad * 4)
        out = pl.pallas_call(
            functools.partial(_fused_kernel, n_layers, tile_n, N),
            out_shape=out_f32,
            grid_spec=pltpu.PrefetchScalarGridSpec(
                num_scalar_prefetch=0,
                grid=(num_tiles,),
                in_specs=in_specs,
                out_specs=pl.BlockSpec((g_pad, out_pad), lambda k: (0, 0)),
                scratch_shapes=[pltpu.VMEM((g_pad, D), jnp.float32)]),
            compiler_params=pltpu.CompilerParams(
                dimension_semantics=("arbitrary",),
                vmem_limit_bytes=vmem_limit),
            cost_estimate=cost,
        )(seg_ids, feat, scale, *w_pads, bias_pack)
    else:
        # 2-TensorCore parts (v7x): both cores stream disjoint node ranges ("parallel"
        # leading axis) into per-core partials; a tiny second pass combines + runs MLP.
        in_specs = [
            _node_spec((1, tile_n),
                       lambda c, k, t=tiles_per_split: (0, c * t + k)),
            _node_spec((tile_n, D),
                       lambda c, k, t=tiles_per_split, lb=last_blk:
                       (jnp.minimum(c * t + k, lb), 0)),        # clamp fully-OOB tiles
        ]
        cost = pl.CostEstimate(
            flops=2 * g_pad * coverage * D,
            transcendentals=0,
            bytes_accessed=N * D * feat_bytes + coverage * 4
                           + num_splits * g_pad * D * 4)
        partials = pl.pallas_call(
            functools.partial(_partial_agg_kernel, tiles_per_split, tile_n, N),
            out_shape=jax.ShapeDtypeStruct((num_splits * g_pad, D), jnp.float32),
            grid_spec=pltpu.PrefetchScalarGridSpec(
                num_scalar_prefetch=0,
                grid=(num_splits, tiles_per_split),
                in_specs=in_specs,
                out_specs=pl.BlockSpec((g_pad, D), lambda c, k: (c, 0)),
                scratch_shapes=[pltpu.VMEM((g_pad, D), jnp.float32)]),
            compiler_params=pltpu.CompilerParams(
                dimension_semantics=("parallel", "arbitrary"),
                vmem_limit_bytes=vmem_limit),
            cost_estimate=cost,
        )(seg_ids, feat)
        out = pl.pallas_call(
            functools.partial(_combine_mlp_kernel, n_layers, num_splits, g_pad),
            out_shape=out_f32,
            in_specs=[vmem_resident] * (2 + n_layers + 1),
            out_specs=vmem_resident,
            compiler_params=pltpu.CompilerParams(vmem_limit_bytes=vmem_limit),
        )(partials, scale, *w_pads, bias_pack)

    # Strip graph / lane padding (batch.system_features['graph_pred'] = result; the
    # AtomGraphs bookkeeping stays in plain JAX).
    return out[:G, :out_dim]


# ----------------------------------------------------------------------------- testing
def _init_linear(key, fan_in, fan_out):
    """PyTorch-style Linear init: U(-1/sqrt(fan_in), 1/sqrt(fan_in))."""
    kw, kb = jax.random.split(key)
    bound = 1.0 / math.sqrt(fan_in)
    w = jax.random.uniform(kw, (fan_in, fan_out), jnp.float32, -bound, bound)
    b = jax.random.uniform(kb, (fan_out,), jnp.float32, -bound, bound)
    return w, b


def _reference_f32(feat, n_node, weights, biases, node_aggregation):
    """Pure f32, unpadded GraphHead.forward reference."""
    G = n_node.shape[0]
    seg = jnp.repeat(jnp.arange(G), n_node, total_repeat_length=feat.shape[0])
    agg = jax.ops.segment_sum(feat.astype(jnp.float32), seg, num_segments=G)
    if node_aggregation == "mean":
        agg = agg / jnp.maximum(n_node.astype(jnp.float32), 1.0)[:, None]
    x = agg
    for i, (w, b) in enumerate(zip(weights, biases)):
        x = x @ w + b
        if i < len(weights) - 1:
            x = jax.nn.softplus(x) - _LN2
    return x


def _reference_kernel_numerics(feat, n_node, weights, biases, node_aggregation):
    """Mirror of the kernel numerics: bf16 MXU operands, f32 accumulation."""
    G = n_node.shape[0]
    seg = jnp.repeat(jnp.arange(G), n_node, total_repeat_length=feat.shape[0])
    onehot = (jnp.arange(G)[:, None] == seg[None, :]).astype(jnp.bfloat16)
    x = jnp.dot(onehot, feat.astype(jnp.bfloat16), preferred_element_type=jnp.float32)
    if node_aggregation == "mean":
        x = x * (1.0 / jnp.maximum(n_node.astype(jnp.float32), 1.0))[:, None]
    for i, (w, b) in enumerate(zip(weights, biases)):
        x = jnp.dot(x.astype(jnp.bfloat16), w.astype(jnp.bfloat16),
                    preferred_element_type=jnp.float32) + b.astype(jnp.float32)
        if i < len(weights) - 1:
            x = jax.nn.softplus(x) - _LN2
    return x


if __name__ == "__main__":
    # Small shapes consistent with GraphHead(latent_dim, num_mlp_layers, mlp_hidden_dim, target)
    latent_dim = 128
    mlp_hidden_dim = 128
    num_mlp_layers = 2
    target_dim = 3
    n_node = jnp.array([50, 60, 70, 20], dtype=jnp.int32)    # 4 graphs in the batch
    n_nodes = int(n_node.sum())                              # 200 nodes total

    key = jax.random.PRNGKey(0)
    k_feat, *k_layers = jax.random.split(key, 2 + num_mlp_layers)
    feat = jax.random.normal(k_feat, (n_nodes, latent_dim), jnp.float32)

    layer_sizes = [latent_dim] + [mlp_hidden_dim] * num_mlp_layers + [target_dim]
    weights, biases = [], []
    for i in range(len(layer_sizes) - 1):
        kk = k_layers[i] if i < len(k_layers) else jax.random.fold_in(key, i)
        w, b = _init_linear(kk, layer_sizes[i], layer_sizes[i + 1])
        weights.append(w)
        biases.append(b)

    ref_mirror = _reference_kernel_numerics(feat, n_node, weights, biases, "mean")
    ref_f32 = _reference_f32(feat, n_node, weights, biases, "mean")

    # 1) Fused single-core path, small tile -> multi-step reduction + ragged last tile.
    pred = graph_head_forward(feat, n_node, weights, biases,
                              node_aggregation="mean", tile_n=128, num_splits=1)
    pred = jax.block_until_ready(pred)
    assert pred.shape == (4, target_dim)
    assert jnp.allclose(pred, ref_mirror, atol=2e-3, rtol=2e-3)
    assert jnp.allclose(pred, ref_f32, atol=5e-2, rtol=5e-2)

    # 2) Dual-core style split path (per-split partials + tiny combine/MLP pass).
    pred2 = graph_head_forward(feat, n_node, weights, biases,
                               node_aggregation="mean", tile_n=128, num_splits=2)
    pred2 = jax.block_until_ready(pred2)
    assert jnp.allclose(pred2, ref_mirror, atol=2e-3, rtol=2e-3)

    # 3) Fully automatic tile / split / VMEM-budget selection.
    pred3 = jax.block_until_ready(
        graph_head_forward(feat, n_node, weights, biases, node_aggregation="mean"))
    assert jnp.allclose(pred3, ref_mirror, atol=2e-3, rtol=2e-3)

    print("KERNEL_OK")
</pallas_src>

<mosaic_0001>
module attributes {stable_mosaic.version = 11 : i64} {
  func.func @_fused_kernel(%arg0: i32, %arg1: memref<1x128xi32, #tpu.memory_space<vmem>>, %arg2: memref<128x128xf32, #tpu.memory_space<vmem>>, %arg3: memref<16x1xf32, #tpu.memory_space<vmem>>, %arg4: memref<128x128xbf16, #tpu.memory_space<vmem>>, %arg5: memref<128x128xbf16, #tpu.memory_space<vmem>>, %arg6: memref<128x128xbf16, #tpu.memory_space<vmem>>, %arg7: memref<3x128xf32, #tpu.memory_space<vmem>>, %arg8: memref<16x128xf32, #tpu.memory_space<vmem>>, %arg9: memref<16x128xf32, #tpu.memory_space<vmem>>) attributes {dimension_semantics = [#tpu.dimension_semantics<arbitrary>], iteration_bounds = array<i64: 2>, scalar_prefetch = 0 : i64, scratch_operands = 1 : i64, tpu.core_type = #tpu.core_type<tc>, window_params = [{transform_indices = @transform_0, window_bounds = array<i64: 1, 128>}, {transform_indices = @transform_1, window_bounds = array<i64: 128, 128>}, {pipeline_mode = #tpu.pipeline_mode<synchronous>, transform_indices = @transform_2, window_bounds = array<i64: 16, 1>}, {pipeline_mode = #tpu.pipeline_mode<synchronous>, transform_indices = @transform_3, window_bounds = array<i64: 128, 128>}, {pipeline_mode = #tpu.pipeline_mode<synchronous>, transform_indices = @transform_4, window_bounds = array<i64: 128, 128>}, {pipeline_mode = #tpu.pipeline_mode<synchronous>, transform_indices = @transform_5, window_bounds = array<i64: 128, 128>}, {pipeline_mode = #tpu.pipeline_mode<synchronous>, transform_indices = @transform_6, window_bounds = array<i64: 3, 128>}, {pipeline_mode = #tpu.pipeline_mode<synchronous>, transform_indices = @transform_7, window_bounds = array<i64: 16, 128>}]} {
    %c0_i32 = arith.constant 0 : i32
    %0 = arith.cmpi eq, %arg0, %c0_i32 : i32
    %1 = arith.extui %0 : i1 to i32
    %c0_i32_0 = arith.constant 0 : i32
    %2 = arith.cmpi ne, %1, %c0_i32_0 : i32
    scf.if %2 {
      %cst_10 = arith.constant 0.000000e+00 : f32
      %30 = vector.broadcast %cst_10 : f32 to vector<16x128xf32>
      %c0_11 = arith.constant 0 : index
      %c0_12 = arith.constant 0 : index
      %31 = vector.load %arg9[%c0_11, %c0_12] : memref<16x128xf32, #tpu.memory_space<vmem>>, vector<16x128xf32>
      tpu.vector_store %arg9[%c0_11, %c0_12], %30 {strides = array<i32>} : memref<16x128xf32, #tpu.memory_space<vmem>>, vector<16x128xf32>,
    } else {
    }
    %c128_i32 = arith.constant 128 : i32
    %3 = arith.muli %arg0, %c128_i32 : i32
    %4 = tpu.iota {dimensions = array<i32: 0>} : vector<16x128xi32>
    %c0 = arith.constant 0 : index
    %c0_1 = arith.constant 0 : index
    %5 = vector.load %arg1[%c0, %c0_1] : memref<1x128xi32, #tpu.memory_space<vmem>>, vector<1x128xi32>
    %6 = vector.broadcast %5 : vector<1x128xi32> to vector<16x128xi32>
    %7 = arith.cmpi eq, %4, %6 : vector<16x128xi32>
    %8 = arith.extui %7 : vector<16x128xi1> to vector<16x128xi32>
    %9 = arith.sitofp %8 : vector<16x128xi32> to vector<16x128xf32>
    %10 = arith.truncf %9 : vector<16x128xf32> to vector<16x128xbf16>
    %11 = tpu.iota {dimensions = array<i32: 0>} : vector<128x1xi32>
    %12 = vector.broadcast %3 : i32 to vector<128x1xi32>
    %13 = arith.addi %11, %12 : vector<128x1xi32>
    %c200_i32 = arith.constant 200 : i32
    %14 = vector.broadcast %c200_i32 : i32 to vector<128x1xi32>
    %15 = arith.cmpi slt, %13, %14 : vector<128x1xi32>
    %c0_2 = arith.constant 0 : index
    %c0_3 = arith.constant 0 : index
    %16 = vector.load %arg2[%c0_2, %c0_3] : memref<128x128xf32, #tpu.memory_space<vmem>>, vector<128x128xf32>
    %17 = arith.truncf %16 : vector<128x128xf32> to vector<128x128xbf16>
    %c0_i32_4 = arith.constant 0 : i32
    %18 = arith.sitofp %c0_i32_4 : i32 to bf16
    %19 = vector.shape_cast %15 : vector<128x1xi1> to vector<128x1xi1>
    %20 = vector.broadcast %19 : vector<128x1xi1> to vector<128x128xi1>
    %21 = vector.broadcast %18 : bf16 to vector<128x128xbf16>
    %22 = arith.select %20, %17, %21 : vector<128x128xi1>, vector<128x128xbf16>
    %c0_5 = arith.constant 0 : index
    %c0_6 = arith.constant 0 : index
    %23 = vector.load %arg9[%c0_5, %c0_6] : memref<16x128xf32, #tpu.memory_space<vmem>>, vector<16x128xf32>
    %cst = arith.constant dense<0.000000e+00> : vector<16x128xf32>
    %24 = tpu.matmul %10, %22, %cst {dimension_numbers = #tpu.dot_dimension_numbers<[1], [0], [0], [1], [0, 0, 1, 1], [], []>} : vector<16x128xbf16>, vector<128x128xbf16>, vector<16x128xf32> -> vector<16x128xf32>
    %25 = arith.addf %23, %24 : vector<16x128xf32>
    %c0_7 = arith.constant 0 : index
    %c0_8 = arith.constant 0 : index
    %26 = vector.load %arg9[%c0_7, %c0_8] : memref<16x128xf32, #tpu.memory_space<vmem>>, vector<16x128xf32>
    tpu.vector_store %arg9[%c0_7, %c0_8], %25 {strides = array<i32>} : memref<16x128xf32, #tpu.memory_space<vmem>>, vector<16x128xf32>,
    %c1_i32 = arith.constant 1 : i32
    %27 = arith.cmpi eq, %arg0, %c1_i32 : i32
    %28 = arith.extui %27 : i1 to i32
    %c0_i32_9 = arith.constant 0 : i32
    %29 = arith.cmpi ne, %28, %c0_i32_9 : i32
    scf.if %29 {
      %c0_10 = arith.constant 0 : index
      %c0_11 = arith.constant 0 : index
      %30 = vector.load %arg9[%c0_10, %c0_11] : memref<16x128xf32, #tpu.memory_space<vmem>>, vector<16x128xf32>
      %c0_12 = arith.constant 0 : index
      %c0_13 = arith.constant 0 : index
      %31 = vector.load %arg3[%c0_12, %c0_13] : memref<16x1xf32, #tpu.memory_space<vmem>>, vector<16x1xf32>
      %32 = vector.broadcast %31 : vector<16x1xf32> to vector<16x128xf32>
      %33 = arith.mulf %30, %32 : vector<16x128xf32>
      %c0_14 = arith.constant 0 : index
      %c0_15 = arith.constant 0 : index
      %34 = vector.load %arg4[%c0_14, %c0_15] : memref<128x128xbf16, #tpu.memory_space<vmem>>, vector<128x128xbf16>
      %c0_16 = arith.constant 0 : index
      %c0_17 = arith.constant 0 : index
      %35 = vector.load %arg7[%c0_16, %c0_17] : memref<3x128xf32, #tpu.memory_space<vmem>>, vector<1x128xf32>
      %36 = arith.truncf %33 : vector<16x128xf32> to vector<16x128xbf16>
      %cst_18 = arith.constant dense<0.000000e+00> : vector<16x128xf32>
      %37 = tpu.matmul %36, %34, %cst_18 {dimension_numbers = #tpu.dot_dimension_numbers<[1], [0], [0], [1], [0, 0, 1, 1], [], []>} : vector<16x128xbf16>, vector<128x128xbf16>, vector<16x128xf32> -> vector<16x128xf32>
      %38 = vector.broadcast %35 : vector<1x128xf32> to vector<16x128xf32>
      %39 = arith.addf %37, %38 : vector<16x128xf32>
      %cst_19 = arith.constant 0.000000e+00 : f32
      %40 = vector.broadcast %cst_19 : f32 to vector<16x128xf32>
      %41 = arith.maximumf %39, %40 : vector<16x128xf32>
      %42 = vector.broadcast %cst_19 : f32 to vector<16x128xf32>
      %43 = arith.subf %39, %42 : vector<16x128xf32>
      %44 = arith.cmpf one, %43, %43 : vector<16x128xf32>
      %45 = vector.broadcast %cst_19 : f32 to vector<16x128xf32>
      %46 = arith.addf %39, %45 : vector<16x128xf32>
      %47 = math.absf %43 : vector<16x128xf32>
      %cst_20 = arith.constant 0.000000e+00 : f32
      %48 = vector.broadcast %cst_20 : f32 to vector<16x128xf32>
      %49 = arith.subf %48, %47 : vector<16x128xf32>
      %50 = math.exp %49 : vector<16x128xf32>
      %51 = math.log1p %50 : vector<16x128xf32>
      %52 = arith.addf %41, %51 : vector<16x128xf32>
      %53 = arith.select %44, %46, %52 : vector<16x128xi1>, vector<16x128xf32>
      %cst_21 = arith.constant 0.693147182 : f32
      %54 = vector.broadcast %cst_21 : f32 to vector<16x128xf32>
      %55 = arith.subf %53, %54 : vector<16x128xf32>
      %c0_22 = arith.constant 0 : index
      %c0_23 = arith.constant 0 : index
      %56 = vector.load %arg5[%c0_22, %c0_23] : memref<128x128xbf16, #tpu.memory_space<vmem>>, vector<128x128xbf16>
      %c1 = arith.constant 1 : index
      %c0_24 = arith.constant 0 : index
      %57 = vector.load %arg7[%c1, %c0_24] : memref<3x128xf32, #tpu.memory_space<vmem>>, vector<1x128xf32>
      %58 = arith.truncf %55 : vector<16x128xf32> to vector<16x128xbf16>
      %cst_25 = arith.constant dense<0.000000e+00> : vector<16x128xf32>
      %59 = tpu.matmul %58, %56, %cst_25 {dimension_numbers = #tpu.dot_dimension_numbers<[1], [0], [0], [1], [0, 0, 1, 1], [], []>} : vector<16x128xbf16>, vector<128x128xbf16>, vector<16x128xf32> -> vector<16x128xf32>
      %60 = vector.broadcast %57 : vector<1x128xf32> to vector<16x128xf32>
      %61 = arith.addf %59, %60 : vector<16x128xf32>
      %cst_26 = arith.constant 0.000000e+00 : f32
      %62 = vector.broadcast %cst_26 : f32 to vector<16x128xf32>
      %63 = arith.maximumf %61, %62 : vector<16x128xf32>
      %64 = vector.broadcast %cst_26 : f32 to vector<16x128xf32>
      %65 = arith.subf %61, %64 : vector<16x128xf32>
      %66 = arith.cmpf one, %65, %65 : vector<16x128xf32>
      %67 = vector.broadcast %cst_26 : f32 to vector<16x128xf32>
      %68 = arith.addf %61, %67 : vector<16x128xf32>
      %69 = math.absf %65 : vector<16x128xf32>
      %cst_27 = arith.constant 0.000000e+00 : f32
      %70 = vector.broadcast %cst_27 : f32 to vector<16x128xf32>
      %71 = arith.subf %70, %69 : vector<16x128xf32>
      %72 = math.exp %71 : vector<16x128xf32>
      %73 = math.log1p %72 : vector<16x128xf32>
      %74 = arith.addf %63, %73 : vector<16x128xf32>
      %75 = arith.select %66, %68, %74 : vector<16x128xi1>, vector<16x128xf32>
      %cst_28 = arith.constant 0.693147182 : f32
      %76 = vector.broadcast %cst_28 : f32 to vector<16x128xf32>
      %77 = arith.subf %75, %76 : vector<16x128xf32>
      %c0_29 = arith.constant 0 : index
      %c0_30 = arith.constant 0 : index
      %78 = vector.load %arg6[%c0_29, %c0_30] : memref<128x128xbf16, #tpu.memory_space<vmem>>, vector<128x128xbf16>
      %c2 = arith.constant 2 : index
      %c0_31 = arith.constant 0 : index
      %79 = vector.load %arg7[%c2, %c0_31] : memref<3x128xf32, #tpu.memory_space<vmem>>, vector<1x128xf32>
      %80 = arith.truncf %77 : vector<16x128xf32> to vector<16x128xbf16>
      %cst_32 = arith.constant dense<0.000000e+00> : vector<16x128xf32>
      %81 = tpu.matmul %80, %78, %cst_32 {dimension_numbers = #tpu.dot_dimension_numbers<[1], [0], [0], [1], [0, 0, 1, 1], [], []>} : vector<16x128xbf16>, vector<128x128xbf16>, vector<16x128xf32> -> vector<16x128xf32>
      %82 = vector.broadcast %79 : vector<1x128xf32> to vector<16x128xf32>
      %83 = arith.addf %81, %82 : vector<16x128xf32>
      %c0_33 = arith.constant 0 : index
      %c0_34 = arith.constant 0 : index
      %84 = vector.load %arg8[%c0_33, %c0_34] : memref<16x128xf32, #tpu.memory_space<vmem>>, vector<16x128xf32>
      tpu.vector_store %arg8[%c0_33, %c0_34], %83 {strides = array<i32>} : memref<16x128xf32, #tpu.memory_space<vmem>>, vector<16x128xf32>,
    } else {
    }
    return
  }
  func.func @transform_0(%arg0: i32) -> (i32, i32) {
    %c0_i32 = arith.constant 0 : i32
    %c0_i32_0 = arith.constant 0 : i32
    return %c0_i32, %arg0 : i32, i32
  }
  func.func @transform_1(%arg0: i32) -> (i32, i32) {
    %c0_i32 = arith.constant 0 : i32
    %c0_i32_0 = arith.constant 0 : i32
    return %arg0, %c0_i32 : i32, i32
  }
  func.func @transform_2(%arg0: i32) -> (i32, i32) {
    %c0_i32 = arith.constant 0 : i32
    %c0_i32_0 = arith.constant 0 : i32
    %c0_i32_1 = arith.constant 0 : i32
    return %c0_i32, %c0_i32_0 : i32, i32
  }
  func.func @transform_3(%arg0: i32) -> (i32, i32) {
    %c0_i32 = arith.constant 0 : i32
    %c0_i32_0 = arith.constant 0 : i32
    %c0_i32_1 = arith.constant 0 : i32
    return %c0_i32, %c0_i32_0 : i32, i32
  }
  func.func @transform_4(%arg0: i32) -> (i32, i32) {
    %c0_i32 = arith.constant 0 : i32
    %c0_i32_0 = arith.constant 0 : i32
    %c0_i32_1 = arith.constant 0 : i32
    return %c0_i32, %c0_i32_0 : i32, i32
  }
  func.func @transform_5(%arg0: i32) -> (i32, i32) {
    %c0_i32 = arith.constant 0 : i32
    %c0_i32_0 = arith.constant 0 : i32
    %c0_i32_1 = arith.constant 0 : i32
    return %c0_i32, %c0_i32_0 : i32, i32
  }
  func.func @transform_6(%arg0: i32) -> (i32, i32) {
    %c0_i32 = arith.constant 0 : i32
    %c0_i32_0 = arith.constant 0 : i32
    %c0_i32_1 = arith.constant 0 : i32
    return %c0_i32, %c0_i32_0 : i32, i32
  }
  func.func @transform_7(%arg0: i32) -> (i32, i32) {
    %c0_i32 = arith.constant 0 : i32
    %c0_i32_0 = arith.constant 0 : i32
    %c0_i32_1 = arith.constant 0 : i32
    return %c0_i32, %c0_i32_0 : i32, i32
  }
}

</mosaic_0001>

<bundles_post_ra>
// kernel: tpu_custom_call.1
= control target key start
LH: loop header
LB: loop body
LE: loop exit
PB: predicated region body
PF: predicated region fallthrough
CT: control target
= control target key end

     0   :  { %12 = vsyncpa [#allocation4], 0  ;;  %s2028_s0 = inlined_call_operand.vmem [shape: s32[1,256], index: 0, kind: input, shape index: {}]   ;;  %s2029_s1 = inlined_call_operand.hbm [shape: f32[200,128], index: 1, kind: input, shape index: {}]   ;;  %s2030_s2 = inlined_call_operand.vmem [shape: f32[16,1], index: 2, kind: input, shape index: {}]   ;;  %s2031_s3 = inlined_call_operand.hbm [shape: bf16[128,128], index: 3, kind: input, shape index: {}]   ;;  %s2032_s4 = inlined_call_operand.hbm [shape: bf16[128,128], index: 4, kind: input, shape index: {}]   ;;  %s2033_s5 = inlined_call_operand.hbm [shape: bf16[128,128], index: 5, kind: input, shape index: {}]   ;;  %s2034_s6 = inlined_call_operand.vmem [shape: f32[3,128], index: 6, kind: input, shape index: {}]   ;;  %s2035_s7 = inlined_call_operand.hbm [shape: f32[16,128], index: 7, kind: output, shape index: {}]  }
   0x1   :  { %14 = vsyncpa [#allocation4 + $0x1], 0 }
   0x2   :  { %15 = vsyncpa [#allocation7], 0 }
   0x3   :  { %16 = vsyncpa [#allocation10], 0 }
   0x4   :  { %17 = vsyncpa [#allocation5], 0  ;;  %s1676_s24 = smov 0   ;;  %s1678_s25 = smov 0  }
   0x5   :  { %s1680_s26 = smov 0   ;;  %s1682_s27 = smov 0  }
   0x6 LB: > { %s1695_s28 = sadd.s32 4294967295, %s1615_s27   ;;  %s1698_s29 = sadd.s32 1, %s1615_s27   ;;  %s1615_s27 = sphi %s1682_s27, %s2055_s27   ;;  %s1611_s26 = sphi %s1680_s26, %s2054_s26   ;;  %s1607_s25 = sphi %s1678_s25, %s2053_s25   ;;  %s1603_s24 = sphi %s1676_s24, %s2052_s24  }
   0x7   : > { %s53_s30 = ssub.s32 %s1615_s27, %s1698_s29  ;;  %s56_s8 = sadd.s32 1, %s1611_s26 }
   0x8   : > { %p54_p0 = scmp.eq.s32.totalorder %s53_s30, 0  ;;  %p63_p1 = scmp.ne.s32.totalorder %s1611_s26, %s1607_s25 }
   0x9   : > { %p64_p2 = scmp.eq.s32.totalorder %s1615_s27, 0  ;;  %p69_p3 = scmp.ne.s32.totalorder %s1607_s25, %s1603_s24 }
   0xa   : > { %s1708_s9 = scalar_select %p54_p0, %s1611_s26, %s56_s8  }
   0xb   : > { %p1710_p4 = por %p64_p2, %p63_p1  ;;  %p2036_p5 = scmp.eq.s32.totalorder %s1695_s28, 0 }
   0xc   : > { %p1130_p6 = scmp.ge.s32.totalorder %s1615_s27, 1  ;;  %p206_p7 = scmp.lt.s32.totalorder %s1615_s27, 3 }
   0xd   : > { %p1719_p8 = por %p2036_p5, %p69_p3  ;;  %s1617_s13 = smov [#allocation6]  }
   0xe   : > { %p1724_p10 = pnand %p1130_p6, %p206_p7  ;;  %s221_s14 = sshll.u32 %s1617_s13, 4  ;;  %s222_s14 = int_to_ptr.vmem [resolvable:$true] %s221_s14 }
   0xf   : > { %s2040_s11 = scalar_select %p1719_p8, 1, 0 }
  0x10   : > { %s2041_s12 = scalar_select %p1724_p10, 1, 0 }
  0x11   : > { %p1332_p11 = pneg %p1724_p10  ;;  %s1618_s16 = smov [#allocation8]  }
  0x12   : > { %s234_s17 = sshll.u32 %s1618_s16, 4  ;;  %s1619_s18 = smov [#allocation9]   ;;  %s235_s17 = int_to_ptr.vmem [resolvable:$true] %s234_s17 }
  0x13   : > { %p1732_p12 = pnand %p1332_p11, %p2036_p5  ;;  %s247_s19 = sshll.u32 %s1619_s18, 4  ;;  %s248_s19 = int_to_ptr.vmem [resolvable:$true] %s247_s19 }
  0x14   : > { %s1452_s20 = scalar_lea.vmem %s222_s14, 1024  ;;  %p1460_p3 = scmp.lt.s32.totalorder %s222_s14, %s222_s14 }
  0x15   : > { %p1443_p13 = pneg %p1732_p12  ;;  %p1453_p0 = scmp.ne.s32.totalorder %s222_s14, %s1452_s20 }
  0x16   : > { %p1461_p6 = scmp.lt.s32.totalorder %s1452_s20, %s1452_s20 }
  0x17   : > { %p1455_p1 = pnand %p1453_p0, %p1443_p13 }
  0x18   : > { %p1462_p7 = por %p1461_p6, %p1460_p3 }
  0x19   : > { %p1456_p2 = pneg %p1455_p1 }
  0x1b   : > { %p1463_p11 = pnand %p1462_p7, %p1456_p2 }
  0x1d   : > { %1466 = shalt.err (!%p1463_p11)
}
  0x1e   : > { %s1620_s21 = smov 64   ;;  %s1621_s22 = smov 4  }
  0x1f   : > { %1335 = dma.hbm_to_vmem [thread:$0]  (!%p1732_p12), %s2031_s3, 1024, %s222_s14, [#allocation7], %s1620_s21, %s1620_s21, %s1621_s22  }
  0x20   : > { %s1478_s30 = scalar_lea.vmem %s235_s17, 1024  ;;  %p1486_p5 = scmp.lt.s32.totalorder %s235_s17, %s235_s17 }
  0x21   : > { %p1479_p9 = scmp.ne.s32.totalorder %s235_s17, %s1478_s30  ;;  %p1487_p8 = scmp.lt.s32.totalorder %s1478_s30, %s1478_s30 }
  0x23   : > { %p1481_p0 = pnand %p1479_p9, %p1443_p13  ;;  %p1488_p3 = por %p1487_p8, %p1486_p5 }
  0x25   : > { %p1482_p1 = pneg %p1481_p0 }
  0x27   : > { %p1489_p2 = pnand %p1488_p3, %p1482_p1 }
  0x29   : > { %1492 = shalt.err (!%p1489_p2)
}
  0x2a   : > { %1338 = dma.hbm_to_vmem [thread:$0]  (!%p1732_p12), %s2032_s4, 1024, %s235_s17, [#allocation7], %s1620_s21, %s1620_s21, %s1621_s22  }
  0x2b   : > { %s1504_s14 = scalar_lea.vmem %s248_s19, 1024  ;;  %p1512_p11 = scmp.lt.s32.totalorder %s248_s19, %s248_s19 }
  0x2c   : > { %p1505_p6 = scmp.ne.s32.totalorder %s248_s19, %s1504_s14  ;;  %p1513_p0 = scmp.lt.s32.totalorder %s1504_s14, %s1504_s14 }
  0x2e   : > { %p1507_p7 = pnand %p1505_p6, %p1443_p13  ;;  %p1514_p10 = por %p1513_p0, %p1512_p11 }
  0x30   : > { %p1508_p9 = pneg %p1507_p7 }
  0x32   : > { %p1515_p5 = pnand %p1514_p10, %p1508_p9 }
  0x34   : > { %1518 = shalt.err (!%p1515_p5)
}
  0x35   : > { %1341 = dma.hbm_to_vmem [thread:$0]  (!%p1732_p12), %s2033_s5, 1024, %s248_s19, [#allocation10], %s1620_s21, %s1620_s21, %s1621_s22  }
  0x36   : > { %p1134_p8 = scmp.ge.s32.totalorder %s1615_s27, 2 }
  0x38   : > { %260 = sbr.rel (%p1134_p8) target bundleno = 93 (0x5d), region = 36 }
  0x3d   : > { %269 = sbr.rel (!%p1710_p4) target bundleno = 93 (0x5d), region = 44  ;;  %s270_s17 = sand.u32 (%p1710_p4), 1, %s1611_s26  }
  0x3e   : > { %s1136_s20 = sshll.u32 (%p1710_p4), %s1615_s27, 4  ;;  %s1135_s23 = sshll.u32 (%p1710_p4), %s270_s17, 7 }
  0x3f   : > { %s276_s24 = ssub.s32 (%p1710_p4), 25, %s1136_s20  ;;  %s1770_s8 = scalar_lea.sflag (%p1710_p4), [#allocation4], %s270_s17 }
  0x40   : > { %p277_p10 = scmp.lt.s32.totalorder (%p1710_p4), %s276_s24, 16  ;;  %s274_s19 = scalar_lea.vmem (%p1710_p4), [#allocation3], %s1135_s23 }
  0x42   : > { %s2057_s24 = smov (!%p277_p10, %s276_s24), 16 }
  0x43   : > { %s1767_s30 = sshll.u32 %s2057_s24, 7 }
  0x44   : > { %s281_s15 = ssub.s32 2048, %s1767_s30 }
  0x45   : > { %282 = vsyncadd %s1770_s8, %s281_s15  ;;  %p1138_p4 = scmp.ne.s32.totalorder %s1767_s30, 0  ;;  %s1198_s10 = sshll.u32 %s1615_s27, 11 }
  0x46   : > { %s1778_s13 = scalar_lea.hbm %s2029_s1, %s1198_s10  ;;  %s287_s14 = sshll.u32 %s274_s19, 4  ;;  %s1780_s14 = int_to_ptr.vmem [resolvable:$true] %s287_s14 }
  0x47   : > { %s1519_s16 = scalar_lea.hbm %s1778_s13, %s1767_s30  ;;  %s1523_s27 = scalar_lea.hbm %s2029_s1, 3200 }
  0x48   : > { %p1520_p12 = scmp.ne.s32.totalorder %s1778_s13, %s1519_s16  ;;  %p1524_p3 = scmp.lt.s32.totalorder %s1778_s13, %s2029_s1 }
  0x49   : > { %p1525_p2 = scmp.lt.s32.totalorder %s1523_s27, %s1519_s16 }
  0x4a   : > { %p1521_p13 = pnand %p1520_p12, %p1138_p4 }
  0x4b   : > { %p1526_p6 = por %p1525_p2, %p1524_p3 }
  0x4c   : > { %p1522_p1 = pneg %p1521_p13 }
  0x4e   : > { %p1527_p7 = pnand %p1526_p6, %p1522_p1 }
  0x50   : > { %1530 = shalt.err (!%p1527_p7)
}
  0x51   : > { %s1531_s24 = scalar_lea.vmem %s1780_s14, %s1767_s30  ;;  %s1622_s15 = smov [#allocation3]  }
  0x52   : > { %p1532_p9 = scmp.ne.s32.totalorder %s1780_s14, %s1531_s24  ;;  %s1535_s19 = sshll.u32 %s1622_s15, 4  ;;  %s1536_s19 = int_to_ptr.vmem [resolvable:$false] %s1535_s19 }
  0x53   : > { %s1537_s10 = scalar_lea.vmem %s1536_s19, 4096  ;;  %p1538_p5 = scmp.lt.s32.totalorder %s1780_s14, %s1536_s19 }
  0x54   : > { %p1533_p11 = pnand %p1532_p9, %p1138_p4  ;;  %p1539_p8 = scmp.lt.s32.totalorder %s1537_s10, %s1531_s24 }
  0x56   : > { %p1534_p0 = pneg %p1533_p11  ;;  %p1540_p10 = por %p1539_p8, %p1538_p5 }
  0x58   : > { %p1541_p12 = pnand %p1540_p10, %p1534_p0 }
  0x5a   : > { %1544 = shalt.err (!%p1541_p12)
}
  0x5b   : > { %s1623_s21 = smov 128   ;;  %s1624_s22 = smov 8  }
  0x5c   : > { %293 = dma.hbm_to_vmem [thread:$0]  (%p1138_p4), %s1778_s13, %s1767_s30, %s1780_s14, %s1770_s8, %s1623_s21, %s1623_s21, %s1624_s22  }
  0x5d PF: > { %p2043_p13 = scmp.ne.s32.totalorder %s2041_s12, 0 }
  0x5e   : > { %s301_s16 = sand.u32 (!%p2043_p13), 1, %s1607_s25   ;;  %p2044_p1 = scmp.ne.s32.totalorder (!%p2043_p13), %s2040_s11, 0 }
  0x5f   : > { %299 = sbr.rel (%p2043_p13) target bundleno = 1204 (0x4b4), region = 48  ;;  %s1143_s18 = sshll.u32 (!%p2043_p13), %s301_s16, 7 }
  0x60   : > { %s302_s17 = scalar_lea.sflag (!%p2043_p13), [#allocation4], %s301_s16  ;;  %s1809_s27 = scalar_lea.vmem (!%p2043_p13), [#allocation3], %s1143_s18 }
  0x64   : > { %1586 = dma.done.wait (%p2044_p1), %s302_s17, 2048  }
  0x65   : > { %1588 = vsyncadd (%p2044_p1), %s302_s17, 4294965248  ;;  %p2045_p3 = scmp.eq.s32.totalorder %s1695_s28, 0 }
  0x67   : > { %1590 = dma.done.wait (%p2045_p3), [#allocation7], 2048   ;;  %p2046_p4 = pmov %p2045_p3 }
  0x68   : > { %p2047_p2 = pmov %p2045_p3 }
  0x69   : > { %1592 = vsyncadd (%p2046_p4), [#allocation7], 4294965248 }
  0x6a   : > { %1594 = dma.done.wait (%p2047_p2), [#allocation10], 1024   ;;  %p2048_p6 = pmov %p2047_p2 }
  0x6b   : > { %p346_p7 = scmp.lt.s32.totalorder %s1695_s28, 1  ;;  %p2049_p9 = scmp.ne.s32.totalorder %s1695_s28, 0 }
  0x6c   : > { %1596 = vsyncadd (%p2048_p6), [#allocation10], 4294966272 }
  0x6d   : > { %s1825_s12 = scalar_select %p346_p7, %s1695_s28, 1 }
  0x6e   : > { %360 = sbr.rel (%p2049_p9) target bundleno = 117 (0x75), region = 68 }
  0x6f   : > { %s348_s8 = scalar_lea.vmem %s2028_s0, %s1825_s12 }
  0x73   : > { %v1625_v0 = vmov 0.0  }
  0x74   : > { %361 = vst [vmem:[#allocation2] sm:$0xff] %v1625_v0  ;;  %362 = vst [vmem:[#allocation2 + $0x8] sm:$0xff] %v1625_v0 }
  0x75 PF: > { %s1148_s13 = sshll.u32 %s1695_s28, 7  ;;  %v364_v1 = vlaneseq  ;;  %v1835_v2 = vld [vmem:[%s1809_s27 + $0x70] sm:$0xff]  ;;  %v1838_v3 = vld [vmem:[%s1809_s27 + $0x78] sm:$0xff]  ;;  %v1626_v4 = vmov 0.0   ;;  %vm1627_vm0 = vmmov 0   ;;  %v1853_v12 = vld [vmem:[%s1809_s27 + $0x60] sm:$0xff] }
  0x76   : > { %1235 = vmatprep.subr.bf16.mxu0 %v1626_v4  ;;  %1251 = vmatprep.mubr.msk.bf16.mxu0 %vm1627_vm0, %v1626_v4  ;;  %v1844_v6 = vstv %s1148_s13  ;;  %v449_v7 = vpack.c.bf16 %v1838_v3, %v1835_v2  ;;  %v1856_v13 = vld [vmem:[%s1809_s27 + $0x68] sm:$0xff]  ;;  %v1867_v22 = vld [vmem:[%s1809_s27 + $0x50] sm:$0xff]  ;;  %v1870_v23 = vld [vmem:[%s1809_s27 + $0x58] sm:$0xff]  ;;  %v1628_v30 = vmov 0   ;;  %p1162_p11 = scmp.ne.s32.totalorder %s1695_s28, 1 }
  0x77   : > { %v1841_v5 = vshrl.u32 %v364_v1, 7  ;;  %v448_v28 = vpack.c.bf16 %v1856_v13, %v1853_v12  ;;  %v447_v29 = vpack.c.bf16 %v1870_v23, %v1867_v22  ;;  %v434_v55 = vld [vmem:[%s1809_s27 + $0x40] sm:$0xff]  ;;  %v435_v56 = vld [vmem:[%s1809_s27 + $0x48] sm:$0xff]  ;;  %v432_v2 = vld [vmem:[%s1809_s27 + $0x30] sm:$0xff] }
  0x78   : > { %v446_v0 = vpack.c.bf16 %v435_v56, %v434_v55  ;;  %v433_v3 = vld [vmem:[%s1809_s27 + $0x38] sm:$0xff]  ;;  %v430_v13 = vld [vmem:[%s1809_s27 + $0x20] sm:$0xff] }
  0x79   : > { %v391_v8 = vadd.s32 112, %v1841_v5  ;;  %v392_v9 = vadd.s32 120, %v1841_v5  ;;  %v389_v10 = vadd.s32 96, %v1841_v5  ;;  %v390_v11 = vadd.s32 104, %v1841_v5 }
  0x7a   : > { %v387_v14 = vadd.s32 80, %v1841_v5  ;;  %v388_v15 = vadd.s32 88, %v1841_v5  ;;  %v385_v16 = vadd.s32 64, %v1841_v5  ;;  %v386_v17 = vadd.s32 72, %v1841_v5 }
  0x7b   : > { %v408_v18 = vadd.s32 %v1844_v6, %v391_v8  ;;  %v409_v19 = vadd.s32 %v1844_v6, %v392_v9  ;;  %v406_v20 = vadd.s32 %v1844_v6, %v389_v10  ;;  %v407_v21 = vadd.s32 %v1844_v6, %v390_v11 }
  0x7c   : > { %v404_v24 = vadd.s32 %v1844_v6, %v387_v14  ;;  %v405_v25 = vadd.s32 %v1844_v6, %v388_v15  ;;  %v402_v26 = vadd.s32 %v1844_v6, %v385_v16  ;;  %v403_v27 = vadd.s32 %v1844_v6, %v386_v17 }
  0x7d   : > { %vm424_vm1 = vcmp.lt.s32.totalorder %v408_v18, 200  ;;  %vm425_vm2 = vcmp.lt.s32.totalorder %v409_v19, 200  ;;  %vm422_vm3 = vcmp.lt.s32.totalorder %v406_v20, 200  ;;  %vm423_vm5 = vcmp.lt.s32.totalorder %v407_v21, 200  ;;  %v428_v19 = vld [vmem:[%s1809_s27 + $0x10] sm:$0xff]  ;;  %v429_v20 = vld [vmem:[%s1809_s27 + $0x18] sm:$0xff] }
  0x7e   : > { %vm496_vm4 = vmpackc.low %vm424_vm1, %vm424_vm1  ;;  %vm420_vm6 = vcmp.lt.s32.totalorder %v404_v24, 200  ;;  %vm421_vm7 = vcmp.lt.s32.totalorder %v405_v25, 200  ;;  %vm418_vm9 = vcmp.lt.s32.totalorder %v402_v26, 200  ;;  %v383_v32 = vadd.s32 48, %v1841_v5  ;;  %v426_v26 = vld [vmem:[%s1809_s27] sm:$0xff] }
  0x7f   : > { %vm497_vm8 = vmpackc.low %vm425_vm2, %vm425_vm2  ;;  %v512_v31 = vsel %vm496_vm4, 65537, %v1628_v30  ;;  %v384_v33 = vadd.s32 56, %v1841_v5  ;;  %vm419_vm11 = vcmp.lt.s32.totalorder %v403_v27, 200  ;;  %v381_v35 = vadd.s32 32, %v1841_v5  ;;  %v427_v27 = vld [vmem:[%s1809_s27 + $0x8] sm:$0xff] }
  0x80   : > { %v513_v34 = vsel %vm497_vm8, 65537, %v1628_v30  ;;  %vm494_vm10 = vmpackc.low %vm422_vm3, %vm422_vm3  ;;  %v382_v36 = vadd.s32 40, %v1841_v5  ;;  %v400_v39 = vadd.s32 %v1844_v6, %v383_v32  ;;  %v379_v44 = vadd.s32 16, %v1841_v5 }
  0x81   : > { %v1159_v37 = vcombine.low %v512_v31, %v513_v34  ;;  %vm495_vm12 = vmpackc.low %vm423_vm5, %vm423_vm5  ;;  %v510_v38 = vsel %vm494_vm10, 65537, %v1628_v30  ;;  %v401_v40 = vadd.s32 %v1844_v6, %v384_v33  ;;  %v398_v42 = vadd.s32 %v1844_v6, %v381_v35  ;;  %v554_v34 = vld [vmem:[#allocation2] sm:$0xff] }
  0x82   : > { %v511_v41 = vsel %vm495_vm12, 65537, %v1628_v30  ;;  %vm492_vm13 = vmpackc.low %vm420_vm6, %vm420_vm6  ;;  %v399_v43 = vadd.s32 %v1844_v6, %v382_v36  ;;  %vm416_vm0 = vcmp.lt.s32.totalorder %v400_v39, 200  ;;  %v380_v53 = vadd.s32 24, %v1841_v5 }
  0x83   : > { %vm545_vm14 = vcmp.ne.s16.totalorder %v1159_v37, 0  ;;  %v1158_v45 = vcombine.low %v510_v38, %v511_v41  ;;  %vm493_vm15 = vmpackc.low %vm421_vm7, %vm421_vm7  ;;  %v508_v46 = vsel %vm492_vm13, 65537, %v1628_v30  ;;  %vm417_vm2 = vcmp.lt.s32.totalorder %v401_v40, 200  ;;  %v555_v38 = vld [vmem:[#allocation2 + $0x8] sm:$0xff] }
  0x84   : > { %v553_v47 = vsel %vm545_vm14, %v449_v7, 0  ;;  %v509_v48 = vsel %vm493_vm15, 65537, %v1628_v30  ;;  %vm490_vm1 = vmpackc.low %vm418_vm9, %vm418_vm9  ;;  %vm414_vm3 = vcmp.lt.s32.totalorder %v398_v42, 200  ;;  %vm415_vm6 = vcmp.lt.s32.totalorder %v399_v43, 200 }
  0x85   : > { %1236 = vmatpush3.bf16.msra.mxu0 %v553_v47  ;;  %vm544_vm4 = vcmp.ne.s16.totalorder %v1158_v45, 0  ;;  %v1157_v49 = vcombine.low %v508_v46, %v509_v48  ;;  %vm491_vm5 = vmpackc.low %vm419_vm11, %vm419_vm11  ;;  %v506_v50 = vsel %vm490_vm1, 65537, %v1628_v30  ;;  %v396_v54 = vadd.s32 %v1844_v6, %v379_v44 }
  0x86   : > { %1237 = vmatprep.subr.bf16.mxu0 %v1626_v4  ;;  %v552_v51 = vsel %vm544_vm4, %v448_v28, 0  ;;  %v507_v52 = vsel %vm491_vm5, 65537, %v1628_v30  ;;  %vm488_vm7 = vmpackc.low %vm416_vm0, %vm416_vm0  ;;  %v397_v61 = vadd.s32 %v1844_v6, %v380_v53  ;;  %v366_v62 = vadd.s32 8, %v1841_v5 }
  0x87   : > { %vm543_vm8 = vcmp.ne.s16.totalorder %v1157_v49, 0  ;;  %v1156_v57 = vcombine.low %v506_v50, %v507_v52  ;;  %vm489_vm9 = vmpackc.low %vm417_vm2, %vm417_vm2  ;;  %v504_v58 = vsel %vm488_vm7, 65537, %v1628_v30  ;;  %vm412_vm12 = vcmp.lt.s32.totalorder %v396_v54, 200 }
  0x88   : > { %v505_v59 = vsel %vm489_vm9, 65537, %v1628_v30  ;;  %vm1918_vm10 = vmpackc.low %vm414_vm3, %vm414_vm3  ;;  %v551_v63 = vsel %vm543_vm8, %v447_v29, 0  ;;  %vm413_vm13 = vcmp.lt.s32.totalorder %v397_v61, 200  ;;  %v394_v1 = vadd.s32 %v1844_v6, %v1841_v5 }
  0x89   : > { %1238 = vmatpush3.bf16.msra.mxu0 %v552_v51  ;;  %vm487_vm11 = vmpackc.low %vm415_vm6, %vm415_vm6  ;;  %vm542_vm14 = vcmp.ne.s16.totalorder %v1156_v57, 0  ;;  %v1155_v7 = vcombine.low %v504_v58, %v505_v59  ;;  %v395_v8 = vadd.s32 %v1844_v6, %v366_v62  ;;  %v502_v9 = vsel %vm1918_vm10, 65537, %v1628_v30  ;;  %v431_v6 = vld [vmem:[%s1809_s27 + $0x28] sm:$0xff] }
  0x8a   : > { %1239 = vmatprep.subr.bf16.mxu0 %v1626_v4  ;;  %v503_v10 = vsel %vm487_vm11, 65537, %v1628_v30  ;;  %vm484_vm15 = vmpackc.low %vm412_vm12, %vm412_vm12  ;;  %vm410_vm1 = vcmp.lt.s32.totalorder %v394_v1, 200  ;;  %v550_v11 = vsel %vm542_vm14, %v446_v0, 0  ;;  %v445_v12 = vpack.c.bf16 %v433_v3, %v432_v2 }
  0x8b   : > { %vm485_vm0 = vmpackc.low %vm413_vm13, %vm413_vm13  ;;  %vm411_vm2 = vcmp.lt.s32.totalorder %v395_v8, 200  ;;  %vm541_vm3 = vcmp.ne.s16.totalorder %v1155_v7, 0  ;;  %v1154_v14 = vcombine.low %v502_v9, %v503_v10  ;;  %v500_v15 = vsel %vm484_vm15, 65537, %v1628_v30 }
  0x8c   : > { %v501_v16 = vsel %vm485_vm0, 65537, %v1628_v30  ;;  %vm482_vm4 = vmpackc.low %vm410_vm1, %vm410_vm1  ;;  %v549_v17 = vsel %vm541_vm3, %v445_v12, 0  ;;  %v444_v18 = vpack.c.bf16 %v431_v6, %v430_v13  ;;  %v443_v25 = vpack.c.bf16 %v429_v20, %v428_v19 }
  0x8d   : > { %1240 = vmatpush3.bf16.msra.mxu0 %v551_v63  ;;  %vm483_vm5 = vmpackc.low %vm411_vm2, %vm411_vm2  ;;  %vm540_vm6 = vcmp.ne.s16.totalorder %v1154_v14, 0  ;;  %v1153_v21 = vcombine.low %v500_v15, %v501_v16  ;;  %v498_v22 = vsel %vm482_vm4, 65537, %v1628_v30  ;;  %v442_v31 = vpack.c.bf16 %v427_v27, %v426_v26 }
  0x8e   : > { %1241 = vmatprep.subr.bf16.mxu0 %v1626_v4  ;;  %v499_v23 = vsel %vm483_vm5, 65537, %v1628_v30  ;;  %v548_v24 = vsel %vm540_vm6, %v444_v18, 0  ;;  %v1149_v30 = vld [vmem:[%s348_s8] ss:$0 sm:$0xff]  ;;  %v1629_v33 = vmov 1.0|1.0  }
  0x8f   : > { %vm539_vm7 = vcmp.ne.s16.totalorder %v1153_v21, 0  ;;  %v1152_v28 = vcombine.low %v498_v22, %v499_v23  ;;  %vm372_vm9 = vcmp.eq.s32.totalorder %v1841_v5, %v1149_v30  ;;  %vm373_vm10 = vcmp.eq.s32.totalorder %v366_v62, %v1149_v30 }
  0x90   : > { %v547_v29 = vsel %vm539_vm7, %v443_v25, 0  ;;  %vm1160_vm11 = vmpackc.low %vm373_vm10, %vm372_vm9 }
  0x91   : > { %1242 = vmatpush3.bf16.msra.mxu0 %v550_v11  ;;  %vm538_vm8 = vcmp.ne.s16.totalorder %v1152_v28, 0 }
  0x92   : > { %1243 = vmatprep.subr.bf16.mxu0 %v1626_v4  ;;  %v546_v32 = vsel %vm538_vm8, %v442_v31, 0 }
  0x95   : > { %1244 = vmatpush3.bf16.msra.mxu0 %v549_v17 }
  0x96   : > { %1245 = vmatprep.subr.bf16.mxu0 %v1626_v4 }
  0x99   : > { %1246 = vmatpush3.bf16.msra.mxu0 %v548_v24 }
  0x9a   : > { %1247 = vmatprep.subr.bf16.mxu0 %v1626_v4 }
  0x9d   : > { %1248 = vmatpush3.bf16.msra.mxu0 %v547_v29 }
  0x9e   : > { %1249 = vmatprep.subr.bf16.mxu0 %v1626_v4 }
  0xa1   : > { %1250 = vmatpush3.bf16.msra.mxu0 %v546_v32 }
  0xa4   : > { %1252 = vmatmul.mubr.msk.bf16.vlgmr.msra.gmra.mxu0 %vm1160_vm11, %v1629_v33 }
 0x164   : > { %v590_v35 = vpop.f32.mrf.mxu0 }
 0x165   : > { %v597_v36 = vadd.f32 %v590_v35, %v554_v34 }
 0x166   : > { %v1253_v37 = vpop.f32.mrf.mxu0 }
 0x167   : > { %599 = vst [vmem:[#allocation2] sm:$0xff] %v597_v36  ;;  %604 = sbr.rel (%p1162_p11) target bundleno = 1188 (0x4a4), region = 72 }
 0x168   : > { %v593_v39 = vpop.f32.mrf.mxu0 }
 0x169   : > { %v598_v40 = vadd.f32 %v593_v39, %v555_v38 }
 0x16a   : > { %v1254_v41 = vpop.f32.mrf.mxu0 }
 0x16b   : > { %600 = vst [vmem:[#allocation2 + $0x8] sm:$0xff] %v598_v40 }
 0x16c   : > { %v607_v4 = vld [vmem:[%s2030_s2] sm:$0xff]  ;;  %v1630_v5 = vmov 0   ;;  %v1631_v42 = vmov 0.0   ;;  %v1401_v43 = vld [vmem:[#allocation6 + $0x38] sm:$0xff]   ;;  %vm1632_vm12 = vmmov 0   ;;  %v1403_v46 = vld [vmem:[#allocation6 + $0x28] sm:$0xff]  }
 0x16d   : > { %1400 = vset.pattern.permute.xlu0 %v1630_v5  ;;  %1255 = vmatprep.subr.bf16.mxu0 %v1631_v42  ;;  %v608_v44 = vld [vmem:[%s2030_s2 + $0x8] sm:$0xff]  ;;  %v1402_v45 = vld [vmem:[#allocation6 + $0x30] sm:$0xff]   ;;  %v1404_v47 = vld [vmem:[#allocation6 + $0x20] sm:$0xff]  }
 0x16e   : > { %611 = vperm.xlu0 %1400, %v607_v4   ;;  %1275 = vmatprep.subr.bf16.mxu1 %v1631_v42  ;;  %v1405_v48 = vld [vmem:[#allocation6 + $0x18] sm:$0xff]   ;;  %v1406_v49 = vld [vmem:[#allocation6 + $0x10] sm:$0xff]   ;;  %v1407_v50 = vld [vmem:[#allocation6 + $0x8] sm:$0xff]  }
 0x16f   : > { %1256 = vmatpush3.bf16.msra.mxu0 %v1401_v43  ;;  %1271 = vmatprep.mubr.msk.bf16.mxu0 %vm1632_vm12, %v1631_v42  ;;  %v1408_v51 = vld [vmem:[#allocation6] sm:$0xff]   ;;  %v605_v53 = vld [vmem:[#allocation2] sm:$0xff]  ;;  %v1409_v59 = vld [vmem:[#allocation8 + $0x38] sm:$0xff]  }
 0x170   : > { %1257 = vmatprep.subr.bf16.mxu0 %v1631_v42  ;;  %1291 = vmatprep.mubr.msk.bf16.mxu1 %vm1632_vm12, %v1631_v42  ;;  %v1410_v60 = vld [vmem:[#allocation8 + $0x30] sm:$0xff]   ;;  %v1411_v61 = vld [vmem:[#allocation8 + $0x28] sm:$0xff]   ;;  %v1412_v62 = vld [vmem:[#allocation8 + $0x20] sm:$0xff]  }
 0x171   : > { %1276 = vmatpush3.bf16.msra.mxu1 %v1409_v59  ;;  %v1413_v63 = vld [vmem:[#allocation8 + $0x18] sm:$0xff]   ;;  %v1414_v0 = vld [vmem:[#allocation8 + $0x10] sm:$0xff]   ;;  %v1415_v1 = vld [vmem:[#allocation8 + $0x8] sm:$0xff]  }
 0x172   : > { %616 = vperm.xlu0 %1400, %v608_v44   ;;  %v606_v54 = vld [vmem:[#allocation2 + $0x8] sm:$0xff]  ;;  %1277 = vmatprep.subr.bf16.mxu1 %v1631_v42  ;;  %v1416_v2 = vld [vmem:[#allocation8] sm:$0xff]   ;;  %v1163_v3 = vld [vmem:[%s2034_s6] ss:$0 sm:$0xff] }
 0x173   : > { %1258 = vmatpush3.bf16.msra.mxu0 %v1402_v45  ;;  %v1417_v44 = vld [vmem:[#allocation9 + $0x38] sm:$0xff]   ;;  %v1418_v45 = vld [vmem:[#allocation9 + $0x30] sm:$0xff]  }
 0x174   : > { %1259 = vmatprep.subr.bf16.mxu0 %v1631_v42 }
 0x175   : > { %1278 = vmatpush3.bf16.msra.mxu1 %v1410_v60 }
 0x176   : > { %1279 = vmatprep.subr.bf16.mxu1 %v1631_v42 }
 0x177   : > { %1260 = vmatpush3.bf16.msra.mxu0 %v1403_v46  ;;  %v1419_v46 = vld [vmem:[#allocation9 + $0x28] sm:$0xff]  }
 0x178   : > { %1261 = vmatprep.subr.bf16.mxu0 %v1631_v42 }
 0x179   : > { %1280 = vmatpush3.bf16.msra.mxu1 %v1411_v61 }
 0x17a   : > { %1281 = vmatprep.subr.bf16.mxu1 %v1631_v42 }
 0x17b   : > { %1262 = vmatpush3.bf16.msra.mxu0 %v1404_v47  ;;  %v1420_v47 = vld [vmem:[#allocation9 + $0x20] sm:$0xff]  }
 0x17c   : > { %1263 = vmatprep.subr.bf16.mxu0 %v1631_v42 }
 0x17d   : > { %1282 = vmatpush3.bf16.msra.mxu1 %v1412_v62 }
 0x17e   : > { %1283 = vmatprep.subr.bf16.mxu1 %v1631_v42 }
 0x17f   : > { %1264 = vmatpush3.bf16.msra.mxu0 %v1405_v48  ;;  %v1421_v48 = vld [vmem:[#allocation9 + $0x18] sm:$0xff]  }
 0x180   : > { %1265 = vmatprep.subr.bf16.mxu0 %v1631_v42 }
 0x181   : > { %1284 = vmatpush3.bf16.msra.mxu1 %v1413_v63 }
 0x182   : > { %1285 = vmatprep.subr.bf16.mxu1 %v1631_v42 }
 0x183   : > { %1266 = vmatpush3.bf16.msra.mxu0 %v1406_v49  ;;  %v1422_v49 = vld [vmem:[#allocation9 + $0x10] sm:$0xff]  }
 0x184   : > { %1267 = vmatprep.subr.bf16.mxu0 %v1631_v42 }
 0x185   : > { %1286 = vmatpush3.bf16.msra.mxu1 %v1414_v0 }
 0x186   : > { %1287 = vmatprep.subr.bf16.mxu1 %v1631_v42 }
 0x187   : > { %1268 = vmatpush3.bf16.msra.mxu0 %v1407_v50  ;;  %v1423_v50 = vld [vmem:[#allocation9 + $0x8] sm:$0xff]  }
 0x188   : > { %1269 = vmatprep.subr.bf16.mxu0 %v1631_v42 }
 0x189   : > { %1288 = vmatpush3.bf16.msra.mxu1 %v1415_v1 }
 0x18a   : > { %1289 = vmatprep.subr.bf16.mxu1 %v1631_v42 }
 0x18b   : > { %1270 = vmatpush3.bf16.msra.mxu0 %v1408_v51  ;;  %v1424_v51 = vld [vmem:[#allocation9] sm:$0xff]  }
 0x18c   : > { %1295 = vmatprep.subr.bf16.mxu0 %v1631_v42 }
 0x18d   : > { %1290 = vmatpush3.bf16.msra.mxu1 %v1416_v2 }
 0x1e9   : > { %v612_v52 = vpop.permute.xlu0 %611 }
 0x1ea   : > { %v619_v56 = vmul.f32 %v612_v52, %v605_v53  ;;  %v1174_v52 = vld [vmem:[%s2034_s6 + $0x1] ss:$0 sm:$0xff] }
 0x1ed   : > { %v617_v55 = vpop.permute.xlu0 %616 }
 0x1ee   : > { %v620_v57 = vmul.f32 %v617_v55, %v606_v54 }
 0x1f0   : > { %v638_v58 = vpack.c.bf16 %v620_v57, %v619_v56 }
 0x1f2   : > { %1272 = vmatmul.mubr.bf16.vlgmr.msra.gmra.mxu0 %v638_v58 }
 0x1f3   : > { %1311 = vmatprep.mubr.msk.bf16.mxu0 %vm1632_vm12, %v1631_v42  ;;  %1296 = vmatpush3.bf16.msra.mxu0 %v1417_v44 }
 0x1f4   : > { %1297 = vmatprep.subr.bf16.mxu0 %v1631_v42 }
 0x1f7   : > { %1298 = vmatpush3.bf16.msra.mxu0 %v1418_v45 }
 0x1f8   : > { %1299 = vmatprep.subr.bf16.mxu0 %v1631_v42 }
 0x1fb   : > { %1300 = vmatpush3.bf16.msra.mxu0 %v1419_v46 }
 0x1fc   : > { %1301 = vmatprep.subr.bf16.mxu0 %v1631_v42 }
 0x1ff   : > { %1302 = vmatpush3.bf16.msra.mxu0 %v1420_v47 }
 0x200   : > { %1303 = vmatprep.subr.bf16.mxu0 %v1631_v42 }
 0x203   : > { %1304 = vmatpush3.bf16.msra.mxu0 %v1421_v48 }
 0x204   : > { %1305 = vmatprep.subr.bf16.mxu0 %v1631_v42 }
 0x207   : > { %1306 = vmatpush3.bf16.msra.mxu0 %v1422_v49 }
 0x208   : > { %1307 = vmatprep.subr.bf16.mxu0 %v1631_v42 }
 0x20b   : > { %1308 = vmatpush3.bf16.msra.mxu0 %v1423_v50 }
 0x20c   : > { %1309 = vmatprep.subr.bf16.mxu0 %v1631_v42 }
 0x20f   : > { %1310 = vmatpush3.bf16.msra.mxu0 %v1424_v51 }
 0x2b2   : > { %v725_v7 = vpop.f32.mrf.mxu0 }
 0x2b3   : > { %v726_v8 = vadd.f32 %v1163_v3, %v725_v7 }
 0x2b4   : > { %v1273_v9 = vpop.f32.mrf.mxu0 }
 0x2b5   : > { %v738_v10 = vand.u32 2147483647, %v726_v8  ;;  %v732_v31 = vmax.f32 %v726_v8, 0.0  ;;  %vm734_vm15 = vcmp.ne.f32.partialorder %v726_v8, %v726_v8 }
 0x2b6   : > { %v728_v11 = vpop.f32.mrf.mxu0 }
 0x2b7   : > { %v740_v12 = vsub.f32 0.0, %v738_v10  ;;  %v729_v13 = vadd.f32 %v1163_v3, %v728_v11 }
 0x2b8   : > { %v1274_v6 = vpop.f32.mrf.mxu0 }
 0x2b9   : > { %v742_v14 = vmul.f32 1.442695, %v740_v12  ;;  %v739_v15 = vand.u32 2147483647, %v729_v13  ;;  %v733_v37 = vmax.f32 %v729_v13, 0.0  ;;  %vm735_vm0 = vcmp.ne.f32.partialorder %v729_v13, %v729_v13 }
 0x2bb   : > { %1425 = vpow2.f32 %v742_v14  ;;  %v741_v16 = vsub.f32 0.0, %v739_v15 }
 0x2bd   : > { %v744_v17 = vmul.f32 1.442695, %v741_v16 }
 0x2bf   : > { %1427 = vpow2.f32 %v744_v17 }
 0x2c8   : > { %v1426_v18 = vpop.eup %1425 }
 0x2c9   : > { %v746_v19 = vadd.f32 1.0, %v1426_v18  ;;  %v749_v22 = vmul.f32 -0.5, %v1426_v18  ;;  %v752_v25 = vand.u32 2147483647, %v1426_v18 }
 0x2cb   : > { %1429 = vlog2.f32 %v746_v19  ;;  %v750_v23 = vadd.f32 1.0, %v749_v22  ;;  %vm753_vm13 = vcmp.lt.f32.partialorder %v752_v25, 0.0004427343 }
 0x2cc   : > { %v1428_v20 = vpop.eup %1427 }
 0x2cd   : > { %v755_v21 = vadd.f32 1.0, %v1428_v20  ;;  %v758_v24 = vmul.f32 -0.5, %v1428_v20  ;;  %v751_v28 = vmul.f32 %v1426_v18, %v750_v23  ;;  %v761_v30 = vand.u32 2147483647, %v1428_v20 }
 0x2cf   : > { %1431 = vlog2.f32 %v755_v21  ;;  %v759_v29 = vadd.f32 1.0, %v758_v24  ;;  %vm762_vm14 = vcmp.lt.f32.partialorder %v761_v30, 0.0004427343 }
 0x2d1   : > { %v760_v36 = vmul.f32 %v1428_v20, %v759_v29  ;;  %v1185_v29 = vld [vmem:[%s2034_s6 + $0x2] ss:$0 sm:$0xff] }
 0x2d8   : > { %v1430_v26 = vpop.eup %1429 }
 0x2d9   : > { %v748_v27 = vmul.f32 0.6931472, %v1430_v26 }
 0x2db   : > { %v754_v32 = vsel %vm753_vm13, %v751_v28, %v748_v27 }
 0x2dc   : > { %v1432_v33 = vpop.eup %1431  ;;  %v764_v34 = vadd.f32 %v754_v32, %v732_v31 }
 0x2dd   : > { %v757_v35 = vmul.f32 0.6931472, %v1432_v33 }
 0x2de   : > { %v766_v40 = vsel %vm734_vm15, %v726_v8, %v764_v34 }
 0x2df   : > { %v763_v38 = vsel %vm762_vm14, %v760_v36, %v757_v35  ;;  %v1172_v4 = vadd.f32 -0.6931472, %v766_v40 }
 0x2e0   : > { %v765_v39 = vadd.f32 %v763_v38, %v733_v37 }
 0x2e2   : > { %v767_v41 = vsel %vm735_vm0, %v729_v13, %v765_v39 }
 0x2e3   : > { %v1173_v5 = vadd.f32 -0.6931472, %v767_v41 }
 0x2e5   : > { %v787_v43 = vpack.c.bf16 %v1173_v5, %v1172_v4 }
 0x2e7   : > { %1292 = vmatmul.mubr.bf16.vlgmr.msra.gmra.mxu1 %v787_v43 }
 0x3a7   : > { %v874_v53 = vpop.f32.mrf.mxu1 }
 0x3a8   : > { %v875_v54 = vadd.f32 %v1174_v52, %v874_v53 }
 0x3a9   : > { %v1293_v55 = vpop.f32.mrf.mxu1 }
 0x3aa   : > { %v887_v56 = vand.u32 2147483647, %v875_v54  ;;  %v881_v14 = vmax.f32 %v875_v54, 0.0  ;;  %vm883_vm3 = vcmp.ne.f32.partialorder %v875_v54, %v875_v54 }
 0x3ab   : > { %v877_v57 = vpop.f32.mrf.mxu1 }
 0x3ac   : > { %v889_v58 = vsub.f32 0.0, %v887_v56  ;;  %v878_v59 = vadd.f32 %v1174_v52, %v877_v57 }
 0x3ad   : > { %v1294_v60 = vpop.f32.mrf.mxu1 }
 0x3ae   : > { %v891_v61 = vmul.f32 1.442695, %v889_v58  ;;  %v888_v62 = vand.u32 2147483647, %v878_v59  ;;  %v882_v21 = vmax.f32 %v878_v59, 0.0  ;;  %vm884_vm4 = vcmp.ne.f32.partialorder %v878_v59, %v878_v59 }
 0x3b0   : > { %1433 = vpow2.f32 %v891_v61  ;;  %v890_v63 = vsub.f32 0.0, %v888_v62 }
 0x3b2   : > { %v893_v0 = vmul.f32 1.442695, %v890_v63 }
 0x3b4   : > { %1435 = vpow2.f32 %v893_v0 }
 0x3bd   : > { %v1434_v42 = vpop.eup %1433 }
 0x3be   : > { %v895_v1 = vadd.f32 1.0, %v1434_v42  ;;  %v898_v7 = vmul.f32 -0.5, %v1434_v42  ;;  %v901_v10 = vand.u32 2147483647, %v1434_v42 }
 0x3c0   : > { %1437 = vlog2.f32 %v895_v1  ;;  %v899_v8 = vadd.f32 1.0, %v898_v7  ;;  %vm902_vm1 = vcmp.lt.f32.partialorder %v901_v10, 0.0004427343 }
 0x3c1   : > { %v1436_v2 = vpop.eup %1435 }
 0x3c2   : > { %v904_v3 = vadd.f32 1.0, %v1436_v2  ;;  %v907_v9 = vmul.f32 -0.5, %v1436_v2  ;;  %v900_v13 = vmul.f32 %v1434_v42, %v899_v8  ;;  %v910_v15 = vand.u32 2147483647, %v1436_v2 }
 0x3c4   : > { %1439 = vlog2.f32 %v904_v3  ;;  %v908_v6 = vadd.f32 1.0, %v907_v9  ;;  %vm911_vm2 = vcmp.lt.f32.partialorder %v910_v15, 0.0004427343 }
 0x3c6   : > { %v909_v20 = vmul.f32 %v1436_v2, %v908_v6 }
 0x3cd   : > { %v1438_v11 = vpop.eup %1437 }
 0x3ce   : > { %v897_v12 = vmul.f32 0.6931472, %v1438_v11 }
 0x3d0   : > { %v903_v16 = vsel %vm902_vm1, %v900_v13, %v897_v12 }
 0x3d1   : > { %v1440_v17 = vpop.eup %1439  ;;  %v913_v18 = vadd.f32 %v903_v16, %v881_v14 }
 0x3d2   : > { %v906_v19 = vmul.f32 0.6931472, %v1440_v17 }
 0x3d3   : > { %v915_v23 = vsel %vm883_vm3, %v875_v54, %v913_v18 }
 0x3d4   : > { %v912_v22 = vsel %vm911_vm2, %v909_v20, %v906_v19  ;;  %v1183_v26 = vadd.f32 -0.6931472, %v915_v23 }
 0x3d5   : > { %v914_v24 = vadd.f32 %v912_v22, %v882_v21 }
 0x3d7   : > { %v916_v25 = vsel %vm884_vm4, %v878_v59, %v914_v24 }
 0x3d8   : > { %v1184_v27 = vadd.f32 -0.6931472, %v916_v25 }
 0x3da   : > { %v936_v28 = vpack.c.bf16 %v1184_v27, %v1183_v26 }
 0x3dc   : > { %1312 = vmatmul.mubr.bf16.vlgmr.msra.gmra.mxu0 %v936_v28 }
 0x49c   : > { %v1023_v31 = vpop.f32.mrf.mxu0 }
 0x49d   : > { %v1024_v30 = vadd.f32 %v1185_v29, %v1023_v31 }
 0x49e   : > { %v1313_v32 = vpop.f32.mrf.mxu0 }
 0x49f   : > { %1030 = vst [vmem:[#allocation11] sm:$0xff] %v1024_v30 }
 0x4a0   : > { %v1026_v33 = vpop.f32.mrf.mxu0 }
 0x4a1   : > { %v1027_v34 = vadd.f32 %v1185_v29, %v1026_v33 }
 0x4a2   : > { %v1314_v35 = vpop.f32.mrf.mxu0 }
 0x4a3   : > { %1031 = vst [vmem:[#allocation11 + $0x8] sm:$0xff] %v1027_v34 }
 0x4a4 PF: > { %p1348_p0 = scmp.eq.s32.totalorder %s1695_s28, 1  ;;  %s1633_s27 = smov [#allocation11]  }
 0x4a5   : > { %s1038_s12 = sshll.u32 %s1633_s27, 4  ;;  %s1039_s12 = int_to_ptr.vmem [resolvable:$true] %s1038_s12 }
 0x4a6   : > { %s1545_s11 = scalar_lea.vmem %s1039_s12, 256  ;;  %p1552_p12 = scmp.lt.s32.totalorder %s1039_s12, %s1039_s12 }
 0x4a7   : > { %p1546_p5 = scmp.ne.s32.totalorder %s1039_s12, %s1545_s11  ;;  %p1553_p13 = scmp.lt.s32.totalorder %s1545_s11, %s1545_s11 }
 0x4a9   : > { %p1547_p8 = pnand %p1546_p5, %p1348_p0  ;;  %p1554_p1 = por %p1553_p13, %p1552_p12 }
 0x4ab   : > { %p1548_p10 = pneg %p1547_p8 }
 0x4ad   : > { %p1555_p3 = pnand %p1554_p1, %p1548_p10 }
 0x4af   : > { %1558 = shalt.err (!%p1555_p3)
}
 0x4b0   : > { %s1634_s30 = smov 128   ;;  %s1635_s8 = smov 8  }
 0x4b1   : > { %1329 = dma.vmem_to_hbm [thread:$0]  (%p1348_p0), %s1039_s12, 256, %s2035_s7, [#allocation5], %s1634_s30, %s1634_s30, %s1635_s8  }
 0x4b2   : > { %1598 = dma.done.wait (%p1348_p0), [#allocation5], 256  }
 0x4b3   : > { %1600 = vsyncadd (%p1348_p0), [#allocation5], 4294967040 }
 0x4b4 PF: > { %p20_p4 = scmp.ge.s32.totalorder %s1698_s29, 4   ;;  %s2052_s24 = smov %s1607_s25 }
 0x4b5   : > { %s2053_s25 = smov %s1611_s26  ;;  %s2054_s26 = smov %s1708_s9 }
 0x4b6   : > { %s2055_s27 = smov %s1698_s29  ;;  %22 = sbr.rel (!%p20_p4) target bundleno = 6 (0x6), region = 108 }
 0x4bb   :  { %1054 = vsyncpa [#allocation4], 1 }
 0x4bc   :  { %1056 = vsyncpa [#allocation4 + $0x1], 1 }
 0x4bd   :  { %1057 = vsyncpa [#allocation7], 1 }
 0x4be   :  { %1058 = vsyncpa [#allocation10], 1 }
 0x4bf   :  { %1059 = vsyncpa [#allocation5], 1 }
 0x4c0   :  { %1061 = vsyncpa [#allocation5 + $0x1], 1 }

</bundles_post_ra>
